<compile_context>
chip_gen: v7x
topology: tpu7x:2x2x1
jax: 0.10.0
libtpu: 0.0.40
codegen_flags: <defaults>
</compile_context>

<pallas_src>
import functools

import jax
import jax.numpy as jnp
from jax.experimental import pallas as pl
from jax.experimental.pallas import tpu as pltpu

# ----------------------------------------------------------------------------
# "cfg" values (mirroring the PyTorch config the module reads)
# ----------------------------------------------------------------------------
NUM_INPUTS = 3                      # len(cfg.inputs)
NUM_OUTPUTS = 2                     # len(cfg.outputs)
NUM_DERIVATIVES = 2                 # cfg.num_derivatives
ADDITIONAL_FEATURES = 1 + NUM_DERIVATIVES
INPUT_SIZE = NUM_INPUTS + ADDITIONAL_FEATURES * NUM_OUTPUTS   # 9
HIDDEN = 32                         # cfg.neurons_per_layer
NUM_LAYERS = 2                      # cfg.hidden_layers (RNN stacked layers)
BATCH = 2
SEQ = 8
DTYPE = jnp.float32


# ----------------------------------------------------------------------------
# Pallas kernel: multi-layer ReLU-RNN over time + final Linear, fully fused.
# Everything is VMEM-resident (no grid); the time recurrence is a fully
# unrolled static loop carrying per-layer (B,H) hidden values in vregs.
# ----------------------------------------------------------------------------
def _rnn_fc_kernel(x_ref,       # (B, S, D_in)  batch_first, like torch
                   h0_ref,      # (L, B, H)
                   wih0_ref,    # (D_in, H)     = W_ih_l0.T
                   whh0_ref,    # (H, H)        = W_hh_l0.T
                   wcat_ref,    # (max(L-1,1), 2H, H) = [W_ih_l.T ; W_hh_l.T], l>=1
                   bias_ref,    # (L, 1, H)     = b_ih_l + b_hh_l (pre-summed)
                   fcw_ref,     # (H, O)        = W_fc.T
                   fcb_ref,     # (1, O)
                   out_ref,     # (B, S, O)
                   hn_ref,      # (L, B, H)
                   *, batch, seq, num_layers):
    hidden = whh0_ref.shape[0]
    out_dim = fcw_ref.shape[-1]

    # ---- hoist every weight / bias load out of the recurrent loop ----------
    wih0 = wih0_ref[...]
    whh0 = whh0_ref[...]
    # NOTE: when num_layers == 1, wcat_ref is a (1, 2H, H) dummy, never read.
    wcats = [wcat_ref[l] for l in range(num_layers - 1)]
    biases = [bias_ref[l] for l in range(num_layers)]            # (1, H) each
    fcw = fcw_ref[...]
    fcb = fcb_ref[...]

    # ---- layer-0 input projection for ALL timesteps at once (off the serial
    #      recurrence path): one (B*S, D) @ (D, H) matmul --------------------
    x2 = x_ref[...].reshape(batch * seq, x_ref.shape[-1])
    pre0 = jnp.dot(x2, wih0, preferred_element_type=jnp.float32)
    pre0 = (pre0 + biases[0]).reshape(batch, seq, hidden)        # (B, S, H)

    # ---- serial time recurrence, fully unrolled (SEQ small & static) -------
    h = [h0_ref[l] for l in range(num_layers)]                   # list of (B, H)
    tops = []
    for t in range(seq):
        # layer 0: x-term precomputed -> single (B,H)@(H,H) matmul per step
        h[0] = jnp.maximum(
            pre0[:, t, :]
            + jnp.dot(h[0], whh0, preferred_element_type=jnp.float32),
            0.0)
        inp = h[0]
        # layers >= 1: fused [inp, h_l] @ [W_ih.T ; W_hh.T] -> ONE matmul
        for l in range(1, num_layers):
            cat = jnp.concatenate([inp, h[l]], axis=1)           # (B, 2H)
            h[l] = jnp.maximum(
                jnp.dot(cat, wcats[l - 1],
                        preferred_element_type=jnp.float32) + biases[l],
                0.0)
            inp = h[l]
        tops.append(inp)

    # ---- final per-layer hidden states --------------------------------------
    for l in range(num_layers):
        hn_ref[l] = h[l].astype(hn_ref.dtype)

    # ---- fc applied to all timesteps at once: one (B*S,H)@(H,O) matmul and a
    #      single store (instead of S masked 2-lane stores) -------------------
    top = jnp.stack(tops, axis=1).reshape(batch * seq, hidden)   # (B*S, H)
    out = jnp.dot(top, fcw, preferred_element_type=jnp.float32) + fcb
    out_ref[...] = out.reshape(batch, seq, out_dim).astype(out_ref.dtype)


def _pallas_rnn_forward(x, h0, packed):
    wih0_t, whh0_t, wcat, bias, fcw_t, fcb = packed
    B, S, _ = x.shape
    H = whh0_t.shape[0]
    O = fcw_t.shape[-1]
    L = bias.shape[0]

    vmem = pl.BlockSpec(memory_space=pltpu.MemorySpace.VMEM)
    out, hn = pl.pallas_call(
        functools.partial(_rnn_fc_kernel, batch=B, seq=S, num_layers=L),
        out_shape=(jax.ShapeDtypeStruct((B, S, O), DTYPE),
                   jax.ShapeDtypeStruct((L, B, H), DTYPE)),
        in_specs=[vmem] * 8,
        out_specs=(vmem, vmem),
    )(x, h0, wih0_t, whh0_t, wcat, bias, fcw_t, fcb)
    return out, hn


@jax.jit
def blackbox_forward(x, packed, hidden=None):
    """x: (B, S, INPUT_SIZE) batch_first, like the PyTorch module.
    Returns (output (B, S, NUM_OUTPUTS), hidden (L, B, H))."""
    B, S, _ = x.shape
    H = packed[1].shape[0]
    L = packed[3].shape[0]
    if hidden is None:
        hidden = jnp.zeros((L, B, H), DTYPE)
    return _pallas_rnn_forward(x.astype(DTYPE), hidden.astype(DTYPE), packed)


# ----------------------------------------------------------------------------
# Deterministic parameter initialization (matches shapes / init schemes of the
# PyTorch module: xavier_uniform for weight_ih & fc, orthogonal for weight_hh,
# zeros for all biases).
# ----------------------------------------------------------------------------
def _xavier_uniform(key, shape):                         # shape = (out, in) torch convention
    fan_out, fan_in = shape
    a = (6.0 / (fan_in + fan_out)) ** 0.5
    return jax.random.uniform(key, shape, DTYPE, -a, a)


def _orthogonal(key, n):
    m = jax.random.normal(key, (n, n), DTYPE)
    q, _ = jnp.linalg.qr(m)
    return q


def init_params(seed=0):
    """Natural (transposed) parameters: used by the pure-JAX reference."""
    key = jax.random.PRNGKey(seed)
    keys = jax.random.split(key, 2 * NUM_LAYERS + 1)

    w_ih0 = _xavier_uniform(keys[0], (HIDDEN, INPUT_SIZE))          # weight_ih_l0
    w_ih_rest = jnp.stack(
        [_xavier_uniform(keys[1 + l], (HIDDEN, HIDDEN)) for l in range(1, NUM_LAYERS)],
        axis=0) if NUM_LAYERS > 1 else jnp.zeros((1, HIDDEN, HIDDEN), DTYPE)
    w_hh = jnp.stack(
        [_orthogonal(keys[NUM_LAYERS + l], HIDDEN) for l in range(NUM_LAYERS)], axis=0)
    b_ih = jnp.zeros((NUM_LAYERS, 1, HIDDEN), DTYPE)
    b_hh = jnp.zeros((NUM_LAYERS, 1, HIDDEN), DTYPE)
    fc_w = _xavier_uniform(keys[-1], (NUM_OUTPUTS, HIDDEN))
    fc_b = jnp.zeros((1, NUM_OUTPUTS), DTYPE)

    return (w_ih0.T,                                     # (D_in, H)
            jnp.transpose(w_ih_rest, (0, 2, 1)),         # (L-1, H, H)
            jnp.transpose(w_hh, (0, 2, 1)),              # (L, H, H)
            b_ih, b_hh,
            fc_w.T,                                      # (H, O)
            fc_b)


def pack_params(params):
    """Pack natural params into the fused layout the kernel consumes."""
    wih0_t, wihr_t, whh_t, b_ih, b_hh, fcw_t, fcb = params
    L = whh_t.shape[0]
    H = whh_t.shape[-1]
    if L > 1:
        # fused per-layer weight for l>=1: [W_ih_l.T ; W_hh_l.T]  -> (L-1, 2H, H)
        wcat = jnp.concatenate([wihr_t, whh_t[1:]], axis=1)
    else:
        wcat = jnp.zeros((1, 2 * H, H), DTYPE)   # dummy, never read when L == 1
    bias = b_ih + b_hh                                   # (L, 1, H) combined bias
    return (wih0_t, whh_t[0], wcat, bias, fcw_t, fcb)


# ----------------------------------------------------------------------------
# Pure-JAX reference (mirrors torch.nn.RNN(relu) + Linear) for validation.
# ----------------------------------------------------------------------------
def reference_forward(x, params):
    (wih0_t, wihr_t, whh_t, b_ih, b_hh, fcw_t, fcb) = params
    B, S, _ = x.shape
    h = jnp.zeros((NUM_LAYERS, B, HIDDEN), DTYPE)
    outs = []
    for t in range(S):
        inp = x[:, t, :]
        hs = []
        for l in range(NUM_LAYERS):
            w_ih_t = wih0_t if l == 0 else wihr_t[l - 1]
            pre = inp @ w_ih_t + h[l] @ whh_t[l] + b_ih[l] + b_hh[l]
            hl = jnp.maximum(pre, 0.0)
            hs.append(hl)
            inp = hl
        h = jnp.stack(hs, axis=0)
        outs.append(inp @ fcw_t + fcb)
    return jnp.stack(outs, axis=1), h


if __name__ == "__main__":
    params = init_params(seed=0)
    packed = pack_params(params)               # packed once, outside jit
    x = jax.random.normal(jax.random.PRNGKey(0), (BATCH, SEQ, INPUT_SIZE), DTYPE)

    out, hidden = blackbox_forward(x, packed)
    out, hidden = jax.block_until_ready((out, hidden))

    ref_out, ref_hidden = reference_forward(x, params)
    assert out.shape == (BATCH, SEQ, NUM_OUTPUTS)
    assert hidden.shape == (NUM_LAYERS, BATCH, HIDDEN)
    assert jnp.allclose(out, ref_out, rtol=1e-5, atol=1e-5)
    assert jnp.allclose(hidden, ref_hidden, rtol=1e-5, atol=1e-5)

    print("KERNEL_OK")
</pallas_src>

<mosaic_0001>
module attributes {stable_mosaic.version = 11 : i64} {
  func.func @_rnn_fc_kernel(%arg0: memref<2x8x9xf32, #tpu.memory_space<vmem>>, %arg1: memref<2x2x32xf32, #tpu.memory_space<vmem>>, %arg2: memref<9x32xf32, #tpu.memory_space<vmem>>, %arg3: memref<32x32xf32, #tpu.memory_space<vmem>>, %arg4: memref<1x64x32xf32, #tpu.memory_space<vmem>>, %arg5: memref<2x1x32xf32, #tpu.memory_space<vmem>>, %arg6: memref<32x2xf32, #tpu.memory_space<vmem>>, %arg7: memref<1x2xf32, #tpu.memory_space<vmem>>, %arg8: memref<2x8x2xf32, #tpu.memory_space<vmem>>, %arg9: memref<2x2x32xf32, #tpu.memory_space<vmem>>) attributes {dimension_semantics = [], scalar_prefetch = 0 : i64, scratch_operands = 0 : i64, tpu.core_type = #tpu.core_type<tc>} {
    %c0 = arith.constant 0 : index
    %c0_0 = arith.constant 0 : index
    %0 = vector.load %arg2[%c0, %c0_0] : memref<9x32xf32, #tpu.memory_space<vmem>>, vector<9x32xf32>
    %c0_1 = arith.constant 0 : index
    %c0_2 = arith.constant 0 : index
    %1 = vector.load %arg3[%c0_1, %c0_2] : memref<32x32xf32, #tpu.memory_space<vmem>>, vector<32x32xf32>
    %c0_3 = arith.constant 0 : index
    %c0_4 = arith.constant 0 : index
    %c0_5 = arith.constant 0 : index
    %2 = vector.load %arg4[%c0_3, %c0_4, %c0_5] : memref<1x64x32xf32, #tpu.memory_space<vmem>>, vector<1x64x32xf32>
    %3 = vector.shape_cast %2 : vector<1x64x32xf32> to vector<64x32xf32>
    %c0_6 = arith.constant 0 : index
    %c0_7 = arith.constant 0 : index
    %c0_8 = arith.constant 0 : index
    %4 = vector.load %arg5[%c0_6, %c0_7, %c0_8] : memref<2x1x32xf32, #tpu.memory_space<vmem>>, vector<1x1x32xf32>
    %5 = vector.shape_cast %4 : vector<1x1x32xf32> to vector<1x32xf32>
    %c1 = arith.constant 1 : index
    %c0_9 = arith.constant 0 : index
    %c0_10 = arith.constant 0 : index
    %6 = vector.load %arg5[%c1, %c0_9, %c0_10] : memref<2x1x32xf32, #tpu.memory_space<vmem>>, vector<1x1x32xf32>
    %7 = vector.shape_cast %6 : vector<1x1x32xf32> to vector<1x32xf32>
    %c0_11 = arith.constant 0 : index
    %c0_12 = arith.constant 0 : index
    %8 = vector.load %arg6[%c0_11, %c0_12] : memref<32x2xf32, #tpu.memory_space<vmem>>, vector<32x2xf32>
    %c0_13 = arith.constant 0 : index
    %c0_14 = arith.constant 0 : index
    %9 = vector.load %arg7[%c0_13, %c0_14] : memref<1x2xf32, #tpu.memory_space<vmem>>, vector<1x2xf32>
    %c0_15 = arith.constant 0 : index
    %c0_16 = arith.constant 0 : index
    %c0_17 = arith.constant 0 : index
    %10 = vector.load %arg0[%c0_15, %c0_16, %c0_17] : memref<2x8x9xf32, #tpu.memory_space<vmem>>, vector<2x8x9xf32>
    %11 = vector.shape_cast %10 : vector<2x8x9xf32> to vector<16x9xf32>
    %cst = arith.constant dense<0.000000e+00> : vector<16x32xf32>
    %12 = tpu.matmul %11, %0, %cst {dimension_numbers = #tpu.dot_dimension_numbers<[1], [0], [0], [1], [0, 0, 1, 1], [], []>} : vector<16x9xf32>, vector<9x32xf32>, vector<16x32xf32> -> vector<16x32xf32>
    %13 = vector.broadcast %5 : vector<1x32xf32> to vector<16x32xf32>
    %14 = arith.addf %12, %13 : vector<16x32xf32>
    %15 = vector.shape_cast %14 : vector<16x32xf32> to vector<2x8x32xf32>
    %c0_18 = arith.constant 0 : index
    %c0_19 = arith.constant 0 : index
    %c0_20 = arith.constant 0 : index
    %16 = vector.load %arg1[%c0_18, %c0_19, %c0_20] : memref<2x2x32xf32, #tpu.memory_space<vmem>>, vector<1x2x32xf32>
    %17 = vector.shape_cast %16 : vector<1x2x32xf32> to vector<2x32xf32>
    %c1_21 = arith.constant 1 : index
    %c0_22 = arith.constant 0 : index
    %c0_23 = arith.constant 0 : index
    %18 = vector.load %arg1[%c1_21, %c0_22, %c0_23] : memref<2x2x32xf32, #tpu.memory_space<vmem>>, vector<1x2x32xf32>
    %19 = vector.shape_cast %18 : vector<1x2x32xf32> to vector<2x32xf32>
    %20 = vector.extract_strided_slice %15 {offsets = [0, 0, 0], sizes = [2, 1, 32], strides = [1, 1, 1]} : vector<2x8x32xf32> to vector<2x1x32xf32>
    %21 = vector.shape_cast %20 : vector<2x1x32xf32> to vector<2x32xf32>
    %cst_24 = arith.constant dense<0.000000e+00> : vector<2x32xf32>
    %22 = tpu.matmul %17, %1, %cst_24 {dimension_numbers = #tpu.dot_dimension_numbers<[1], [0], [0], [1], [0, 0, 1, 1], [], []>} : vector<2x32xf32>, vector<32x32xf32>, vector<2x32xf32> -> vector<2x32xf32>
    %23 = arith.addf %21, %22 : vector<2x32xf32>
    %cst_25 = arith.constant 0.000000e+00 : f32
    %24 = vector.broadcast %cst_25 : f32 to vector<2x32xf32>
    %25 = arith.maximumf %23, %24 : vector<2x32xf32>
    %26 = tpu.concatenate %25, %19 in 1 : vector<2x32xf32>, vector<2x32xf32> -> vector<2x64xf32>
    %cst_26 = arith.constant dense<0.000000e+00> : vector<2x32xf32>
    %27 = tpu.matmul %26, %3, %cst_26 {dimension_numbers = #tpu.dot_dimension_numbers<[1], [0], [0], [1], [0, 0, 1, 1], [], []>} : vector<2x64xf32>, vector<64x32xf32>, vector<2x32xf32> -> vector<2x32xf32>
    %28 = vector.broadcast %7 : vector<1x32xf32> to vector<2x32xf32>
    %29 = arith.addf %27, %28 : vector<2x32xf32>
    %cst_27 = arith.constant 0.000000e+00 : f32
    %30 = vector.broadcast %cst_27 : f32 to vector<2x32xf32>
    %31 = arith.maximumf %29, %30 : vector<2x32xf32>
    %32 = vector.extract_strided_slice %15 {offsets = [0, 1, 0], sizes = [2, 1, 32], strides = [1, 1, 1]} : vector<2x8x32xf32> to vector<2x1x32xf32>
    %33 = vector.shape_cast %32 : vector<2x1x32xf32> to vector<2x32xf32>
    %cst_28 = arith.constant dense<0.000000e+00> : vector<2x32xf32>
    %34 = tpu.matmul %25, %1, %cst_28 {dimension_numbers = #tpu.dot_dimension_numbers<[1], [0], [0], [1], [0, 0, 1, 1], [], []>} : vector<2x32xf32>, vector<32x32xf32>, vector<2x32xf32> -> vector<2x32xf32>
    %35 = arith.addf %33, %34 : vector<2x32xf32>
    %cst_29 = arith.constant 0.000000e+00 : f32
    %36 = vector.broadcast %cst_29 : f32 to vector<2x32xf32>
    %37 = arith.maximumf %35, %36 : vector<2x32xf32>
    %38 = tpu.concatenate %37, %31 in 1 : vector<2x32xf32>, vector<2x32xf32> -> vector<2x64xf32>
    %cst_30 = arith.constant dense<0.000000e+00> : vector<2x32xf32>
    %39 = tpu.matmul %38, %3, %cst_30 {dimension_numbers = #tpu.dot_dimension_numbers<[1], [0], [0], [1], [0, 0, 1, 1], [], []>} : vector<2x64xf32>, vector<64x32xf32>, vector<2x32xf32> -> vector<2x32xf32>
    %40 = vector.broadcast %7 : vector<1x32xf32> to vector<2x32xf32>
    %41 = arith.addf %39, %40 : vector<2x32xf32>
    %cst_31 = arith.constant 0.000000e+00 : f32
    %42 = vector.broadcast %cst_31 : f32 to vector<2x32xf32>
    %43 = arith.maximumf %41, %42 : vector<2x32xf32>
    %44 = vector.extract_strided_slice %15 {offsets = [0, 2, 0], sizes = [2, 1, 32], strides = [1, 1, 1]} : vector<2x8x32xf32> to vector<2x1x32xf32>
    %45 = vector.shape_cast %44 : vector<2x1x32xf32> to vector<2x32xf32>
    %cst_32 = arith.constant dense<0.000000e+00> : vector<2x32xf32>
    %46 = tpu.matmul %37, %1, %cst_32 {dimension_numbers = #tpu.dot_dimension_numbers<[1], [0], [0], [1], [0, 0, 1, 1], [], []>} : vector<2x32xf32>, vector<32x32xf32>, vector<2x32xf32> -> vector<2x32xf32>
    %47 = arith.addf %45, %46 : vector<2x32xf32>
    %cst_33 = arith.constant 0.000000e+00 : f32
    %48 = vector.broadcast %cst_33 : f32 to vector<2x32xf32>
    %49 = arith.maximumf %47, %48 : vector<2x32xf32>
    %50 = tpu.concatenate %49, %43 in 1 : vector<2x32xf32>, vector<2x32xf32> -> vector<2x64xf32>
    %cst_34 = arith.constant dense<0.000000e+00> : vector<2x32xf32>
    %51 = tpu.matmul %50, %3, %cst_34 {dimension_numbers = #tpu.dot_dimension_numbers<[1], [0], [0], [1], [0, 0, 1, 1], [], []>} : vector<2x64xf32>, vector<64x32xf32>, vector<2x32xf32> -> vector<2x32xf32>
    %52 = vector.broadcast %7 : vector<1x32xf32> to vector<2x32xf32>
    %53 = arith.addf %51, %52 : vector<2x32xf32>
    %cst_35 = arith.constant 0.000000e+00 : f32
    %54 = vector.broadcast %cst_35 : f32 to vector<2x32xf32>
    %55 = arith.maximumf %53, %54 : vector<2x32xf32>
    %56 = vector.extract_strided_slice %15 {offsets = [0, 3, 0], sizes = [2, 1, 32], strides = [1, 1, 1]} : vector<2x8x32xf32> to vector<2x1x32xf32>
    %57 = vector.shape_cast %56 : vector<2x1x32xf32> to vector<2x32xf32>
    %cst_36 = arith.constant dense<0.000000e+00> : vector<2x32xf32>
    %58 = tpu.matmul %49, %1, %cst_36 {dimension_numbers = #tpu.dot_dimension_numbers<[1], [0], [0], [1], [0, 0, 1, 1], [], []>} : vector<2x32xf32>, vector<32x32xf32>, vector<2x32xf32> -> vector<2x32xf32>
    %59 = arith.addf %57, %58 : vector<2x32xf32>
    %cst_37 = arith.constant 0.000000e+00 : f32
    %60 = vector.broadcast %cst_37 : f32 to vector<2x32xf32>
    %61 = arith.maximumf %59, %60 : vector<2x32xf32>
    %62 = tpu.concatenate %61, %55 in 1 : vector<2x32xf32>, vector<2x32xf32> -> vector<2x64xf32>
    %cst_38 = arith.constant dense<0.000000e+00> : vector<2x32xf32>
    %63 = tpu.matmul %62, %3, %cst_38 {dimension_numbers = #tpu.dot_dimension_numbers<[1], [0], [0], [1], [0, 0, 1, 1], [], []>} : vector<2x64xf32>, vector<64x32xf32>, vector<2x32xf32> -> vector<2x32xf32>
    %64 = vector.broadcast %7 : vector<1x32xf32> to vector<2x32xf32>
    %65 = arith.addf %63, %64 : vector<2x32xf32>
    %cst_39 = arith.constant 0.000000e+00 : f32
    %66 = vector.broadcast %cst_39 : f32 to vector<2x32xf32>
    %67 = arith.maximumf %65, %66 : vector<2x32xf32>
    %68 = vector.extract_strided_slice %15 {offsets = [0, 4, 0], sizes = [2, 1, 32], strides = [1, 1, 1]} : vector<2x8x32xf32> to vector<2x1x32xf32>
    %69 = vector.shape_cast %68 : vector<2x1x32xf32> to vector<2x32xf32>
    %cst_40 = arith.constant dense<0.000000e+00> : vector<2x32xf32>
    %70 = tpu.matmul %61, %1, %cst_40 {dimension_numbers = #tpu.dot_dimension_numbers<[1], [0], [0], [1], [0, 0, 1, 1], [], []>} : vector<2x32xf32>, vector<32x32xf32>, vector<2x32xf32> -> vector<2x32xf32>
    %71 = arith.addf %69, %70 : vector<2x32xf32>
    %cst_41 = arith.constant 0.000000e+00 : f32
    %72 = vector.broadcast %cst_41 : f32 to vector<2x32xf32>
    %73 = arith.maximumf %71, %72 : vector<2x32xf32>
    %74 = tpu.concatenate %73, %67 in 1 : vector<2x32xf32>, vector<2x32xf32> -> vector<2x64xf32>
    %cst_42 = arith.constant dense<0.000000e+00> : vector<2x32xf32>
    %75 = tpu.matmul %74, %3, %cst_42 {dimension_numbers = #tpu.dot_dimension_numbers<[1], [0], [0], [1], [0, 0, 1, 1], [], []>} : vector<2x64xf32>, vector<64x32xf32>, vector<2x32xf32> -> vector<2x32xf32>
    %76 = vector.broadcast %7 : vector<1x32xf32> to vector<2x32xf32>
    %77 = arith.addf %75, %76 : vector<2x32xf32>
    %cst_43 = arith.constant 0.000000e+00 : f32
    %78 = vector.broadcast %cst_43 : f32 to vector<2x32xf32>
    %79 = arith.maximumf %77, %78 : vector<2x32xf32>
    %80 = vector.extract_strided_slice %15 {offsets = [0, 5, 0], sizes = [2, 1, 32], strides = [1, 1, 1]} : vector<2x8x32xf32> to vector<2x1x32xf32>
    %81 = vector.shape_cast %80 : vector<2x1x32xf32> to vector<2x32xf32>
    %cst_44 = arith.constant dense<0.000000e+00> : vector<2x32xf32>
    %82 = tpu.matmul %73, %1, %cst_44 {dimension_numbers = #tpu.dot_dimension_numbers<[1], [0], [0], [1], [0, 0, 1, 1], [], []>} : vector<2x32xf32>, vector<32x32xf32>, vector<2x32xf32> -> vector<2x32xf32>
    %83 = arith.addf %81, %82 : vector<2x32xf32>
    %cst_45 = arith.constant 0.000000e+00 : f32
    %84 = vector.broadcast %cst_45 : f32 to vector<2x32xf32>
    %85 = arith.maximumf %83, %84 : vector<2x32xf32>
    %86 = tpu.concatenate %85, %79 in 1 : vector<2x32xf32>, vector<2x32xf32> -> vector<2x64xf32>
    %cst_46 = arith.constant dense<0.000000e+00> : vector<2x32xf32>
    %87 = tpu.matmul %86, %3, %cst_46 {dimension_numbers = #tpu.dot_dimension_numbers<[1], [0], [0], [1], [0, 0, 1, 1], [], []>} : vector<2x64xf32>, vector<64x32xf32>, vector<2x32xf32> -> vector<2x32xf32>
    %88 = vector.broadcast %7 : vector<1x32xf32> to vector<2x32xf32>
    %89 = arith.addf %87, %88 : vector<2x32xf32>
    %cst_47 = arith.constant 0.000000e+00 : f32
    %90 = vector.broadcast %cst_47 : f32 to vector<2x32xf32>
    %91 = arith.maximumf %89, %90 : vector<2x32xf32>
    %92 = vector.extract_strided_slice %15 {offsets = [0, 6, 0], sizes = [2, 1, 32], strides = [1, 1, 1]} : vector<2x8x32xf32> to vector<2x1x32xf32>
    %93 = vector.shape_cast %92 : vector<2x1x32xf32> to vector<2x32xf32>
    %cst_48 = arith.constant dense<0.000000e+00> : vector<2x32xf32>
    %94 = tpu.matmul %85, %1, %cst_48 {dimension_numbers = #tpu.dot_dimension_numbers<[1], [0], [0], [1], [0, 0, 1, 1], [], []>} : vector<2x32xf32>, vector<32x32xf32>, vector<2x32xf32> -> vector<2x32xf32>
    %95 = arith.addf %93, %94 : vector<2x32xf32>
    %cst_49 = arith.constant 0.000000e+00 : f32
    %96 = vector.broadcast %cst_49 : f32 to vector<2x32xf32>
    %97 = arith.maximumf %95, %96 : vector<2x32xf32>
    %98 = tpu.concatenate %97, %91 in 1 : vector<2x32xf32>, vector<2x32xf32> -> vector<2x64xf32>
    %cst_50 = arith.constant dense<0.000000e+00> : vector<2x32xf32>
    %99 = tpu.matmul %98, %3, %cst_50 {dimension_numbers = #tpu.dot_dimension_numbers<[1], [0], [0], [1], [0, 0, 1, 1], [], []>} : vector<2x64xf32>, vector<64x32xf32>, vector<2x32xf32> -> vector<2x32xf32>
    %100 = vector.broadcast %7 : vector<1x32xf32> to vector<2x32xf32>
    %101 = arith.addf %99, %100 : vector<2x32xf32>
    %cst_51 = arith.constant 0.000000e+00 : f32
    %102 = vector.broadcast %cst_51 : f32 to vector<2x32xf32>
    %103 = arith.maximumf %101, %102 : vector<2x32xf32>
    %104 = vector.extract_strided_slice %15 {offsets = [0, 7, 0], sizes = [2, 1, 32], strides = [1, 1, 1]} : vector<2x8x32xf32> to vector<2x1x32xf32>
    %105 = vector.shape_cast %104 : vector<2x1x32xf32> to vector<2x32xf32>
    %cst_52 = arith.constant dense<0.000000e+00> : vector<2x32xf32>
    %106 = tpu.matmul %97, %1, %cst_52 {dimension_numbers = #tpu.dot_dimension_numbers<[1], [0], [0], [1], [0, 0, 1, 1], [], []>} : vector<2x32xf32>, vector<32x32xf32>, vector<2x32xf32> -> vector<2x32xf32>
    %107 = arith.addf %105, %106 : vector<2x32xf32>
    %cst_53 = arith.constant 0.000000e+00 : f32
    %108 = vector.broadcast %cst_53 : f32 to vector<2x32xf32>
    %109 = arith.maximumf %107, %108 : vector<2x32xf32>
    %110 = tpu.concatenate %109, %103 in 1 : vector<2x32xf32>, vector<2x32xf32> -> vector<2x64xf32>
    %cst_54 = arith.constant dense<0.000000e+00> : vector<2x32xf32>
    %111 = tpu.matmul %110, %3, %cst_54 {dimension_numbers = #tpu.dot_dimension_numbers<[1], [0], [0], [1], [0, 0, 1, 1], [], []>} : vector<2x64xf32>, vector<64x32xf32>, vector<2x32xf32> -> vector<2x32xf32>
    %112 = vector.broadcast %7 : vector<1x32xf32> to vector<2x32xf32>
    %113 = arith.addf %111, %112 : vector<2x32xf32>
    %cst_55 = arith.constant 0.000000e+00 : f32
    %114 = vector.broadcast %cst_55 : f32 to vector<2x32xf32>
    %115 = arith.maximumf %113, %114 : vector<2x32xf32>
    %c0_56 = arith.constant 0 : index
    %c0_57 = arith.constant 0 : index
    %c0_58 = arith.constant 0 : index
    %116 = vector.load %arg9[%c0_56, %c0_57, %c0_58] : memref<2x2x32xf32, #tpu.memory_space<vmem>>, vector<1x2x32xf32>
    %117 = vector.shape_cast %116 : vector<1x2x32xf32> to vector<2x32xf32>
    %118 = vector.shape_cast %109 : vector<2x32xf32> to vector<1x2x32xf32>
    tpu.vector_store %arg9[%c0_56, %c0_57, %c0_58], %118 {strides = array<i32>} : memref<2x2x32xf32, #tpu.memory_space<vmem>>, vector<1x2x32xf32>,
    %c1_59 = arith.constant 1 : index
    %c0_60 = arith.constant 0 : index
    %c0_61 = arith.constant 0 : index
    %119 = vector.load %arg9[%c1_59, %c0_60, %c0_61] : memref<2x2x32xf32, #tpu.memory_space<vmem>>, vector<1x2x32xf32>
    %120 = vector.shape_cast %119 : vector<1x2x32xf32> to vector<2x32xf32>
    %121 = vector.shape_cast %115 : vector<2x32xf32> to vector<1x2x32xf32>
    tpu.vector_store %arg9[%c1_59, %c0_60, %c0_61], %121 {strides = array<i32>} : memref<2x2x32xf32, #tpu.memory_space<vmem>>, vector<1x2x32xf32>,
    %122 = vector.shape_cast %31 : vector<2x32xf32> to vector<2x1x32xf32>
    %123 = vector.shape_cast %43 : vector<2x32xf32> to vector<2x1x32xf32>
    %124 = vector.shape_cast %55 : vector<2x32xf32> to vector<2x1x32xf32>
    %125 = vector.shape_cast %67 : vector<2x32xf32> to vector<2x1x32xf32>
    %126 = vector.shape_cast %79 : vector<2x32xf32> to vector<2x1x32xf32>
    %127 = vector.shape_cast %91 : vector<2x32xf32> to vector<2x1x32xf32>
    %128 = vector.shape_cast %103 : vector<2x32xf32> to vector<2x1x32xf32>
    %129 = vector.shape_cast %115 : vector<2x32xf32> to vector<2x1x32xf32>
    %130 = tpu.concatenate %122, %123, %124, %125, %126, %127, %128, %129 in 1 : vector<2x1x32xf32>, vector<2x1x32xf32>, vector<2x1x32xf32>, vector<2x1x32xf32>, vector<2x1x32xf32>, vector<2x1x32xf32>, vector<2x1x32xf32>, vector<2x1x32xf32> -> vector<2x8x32xf32>
    %131 = vector.shape_cast %130 : vector<2x8x32xf32> to vector<16x32xf32>
    %cst_62 = arith.constant dense<0.000000e+00> : vector<16x2xf32>
    %132 = tpu.matmul %131, %8, %cst_62 {dimension_numbers = #tpu.dot_dimension_numbers<[1], [0], [0], [1], [0, 0, 1, 1], [], []>} : vector<16x32xf32>, vector<32x2xf32>, vector<16x2xf32> -> vector<16x2xf32>
    %133 = vector.broadcast %9 : vector<1x2xf32> to vector<16x2xf32>
    %134 = arith.addf %132, %133 : vector<16x2xf32>
    %135 = vector.shape_cast %134 : vector<16x2xf32> to vector<2x8x2xf32>
    %c0_63 = arith.constant 0 : index
    %c0_64 = arith.constant 0 : index
    %c0_65 = arith.constant 0 : index
    %136 = vector.load %arg8[%c0_63, %c0_64, %c0_65] : memref<2x8x2xf32, #tpu.memory_space<vmem>>, vector<2x8x2xf32>
    tpu.vector_store %arg8[%c0_63, %c0_64, %c0_65], %135 {strides = array<i32>} : memref<2x8x2xf32, #tpu.memory_space<vmem>>, vector<2x8x2xf32>,
    return
  }
}

</mosaic_0001>

<bundles_post_ra>
// kernel: blackbox_forward.1
= control target key start
LH: loop header
LB: loop body
LE: loop exit
PB: predicated region body
PF: predicated region fallthrough
CT: control target
= control target key end

     0   :  { %vm69_vm0 = vcmask 1040384   ;;  %v2502_v2 = vmov 0.0|0.0   ;;  %vm2503_vm1 = vmmov 1   ;;  %vm62_vm3 = vcmask 72704   ;;  %s2926_s0 = inlined_call_operand.vmem [shape: f32[2,8,9], index: 0, kind: input, shape index: {}]   ;;  %s2927_s1 = inlined_call_operand.vmem [shape: f32[2,2,32], index: 1, kind: input, shape index: {}]   ;;  %s2928_s2 = inlined_call_operand.vmem [shape: f32[9,32], index: 2, kind: input, shape index: {}]   ;;  %s2929_s3 = inlined_call_operand.vmem [shape: f32[32,32], index: 3, kind: input, shape index: {}]   ;;  %s2930_s4 = inlined_call_operand.vmem [shape: f32[1,64,32], index: 4, kind: input, shape index: {}]   ;;  %s2931_s5 = inlined_call_operand.vmem [shape: f32[2,1,32], index: 5, kind: input, shape index: {}]   ;;  %s2932_s6 = inlined_call_operand.vmem [shape: f32[32,2], index: 6, kind: input, shape index: {}]   ;;  %s2933_s7 = inlined_call_operand.vmem [shape: f32[1,2], index: 7, kind: input, shape index: {}]   ;;  %s2934_s8 = inlined_call_operand.vmem [shape: f32[2,8,2], index: 8, kind: output, shape index: {0}]   ;;  %s2935_s9 = inlined_call_operand.hbm [shape: f32[2,2,32], index: 9, kind: output, shape index: {1}]  }
   0x1   :  { %v32_v0 = vld [vmem:[%s2928_s2] sm:$0xff]  ;;  %v33_v1 = vld [vmem:[%s2928_s2 + $0x8] sm:$0x1]  ;;  %2318 = vmatprep.subr.bf16.mxu1 %v2502_v2  ;;  %vm2568_vm2 = vmpackc.low %vm69_vm0, %vm2503_vm1  ;;  %vm2504_vm4 = vmmov 0   ;;  %v2505_v10 = vmov 0.0  }
   0x2   :  { %v2312_v3 = vpack.c.bf16 %v33_v1, %v32_v0  ;;  %v34_v5 = vld [vmem:[%s2929_s3] sm:$0xff]  ;;  %v35_v6 = vld [vmem:[%s2929_s3 + $0x8] sm:$0xff]  ;;  %v36_v9 = vld [vmem:[%s2929_s3 + $0x10] sm:$0xff]  ;;  %2069 = vmatprep.mubr.msk.f32.mxu1 %vm2504_vm4, %v2505_v10 }
   0x3   :  { %v2578_v7 = vpack.c.bf16 %v35_v6, %v34_v5  ;;  %v54_v8 = vld [vmem:[%s2926_s0] sm:$0xff]  ;;  %v55_v11 = vld [vmem:[%s2926_s0 + $0x8] sm:$0xff]  ;;  %v37_v12 = vld [vmem:[%s2929_s3 + $0x18] sm:$0xff] }
   0x4   :  { %2314 = vmatprep.subr.msk.bf16.mxu0 %vm2568_vm2, %v2312_v3  ;;  %2058 = vmatprep.mubr.msk.f32.mxu0 %vm62_vm3, %v54_v8  ;;  %v1911_v13 = vld [vmem:[%s2927_s1 + $0x2] sm:$0x3]  ;;  %v2603_v14 = vpack.c.bf16 %v37_v12, %v36_v9  ;;  %v39_v16 = vld [vmem:[%s2930_s4 + $0x8] sm:$0xff] }
   0x5   :  { %2320 = vmatpush3.bf16.msra.mxu1 %v2578_v7  ;;  %2317 = vmatpush3.bf16.msk.msra.mxu0 %vm2568_vm2, %v2312_v3  ;;  %v38_v15 = vld [vmem:[%s2930_s4] sm:$0xff] }
   0x6   :  { %15 = vsyncpa [#allocation3], 0  ;;  %2321 = vmatprep.subr.bf16.mxu1 %v2502_v2  ;;  %s2506_s3 = smov 32   ;;  %v2613_v17 = vpack.c.bf16 %v39_v16, %v38_v15  ;;  %2324 = vmatprep.subr.bf16.mxu0 %v2502_v2  ;;  %v148_v18 = vld [vmem:[%s2927_s1] sm:$0x3]  ;;  %vm151_vm5 = vcmask 261120  }
   0x7   :  { %240 = vrot.lane.b32.xlu0 %v1911_v13, %s2506_s3  ;;  %v40_v19 = vld [vmem:[%s2930_s4 + $0x10] sm:$0xff]  ;;  %v41_v20 = vld [vmem:[%s2930_s4 + $0x18] sm:$0xff]  ;;  %v42_v22 = vld [vmem:[%s2930_s4 + $0x20] sm:$0xff]  ;;  %vm236_vm6 = vcmask 1041409   ;;  %vm250_vm7 = vcmask 523264   ;;  %vm408_vm8 = vcmask 1042434  }
   0x8   :  { %2059 = vmatmul.mubr.msk.f32.vlgmr.msra.gmra.mrb[0].mxu0 %vm62_vm3, %v55_v11  ;;  %v2639_v21 = vpack.c.bf16 %v41_v20, %v40_v19  ;;  %v43_v23 = vld [vmem:[%s2930_s4 + $0x28] sm:$0xff]  ;;  %v44_v25 = vld [vmem:[%s2930_s4 + $0x30] sm:$0xff]  ;;  %v45_v26 = vld [vmem:[%s2930_s4 + $0x38] sm:$0xff]  ;;  %vm578_vm9 = vcmask 1043459   ;;  %v1530_v20 = vlaneseq  ;;  %vm749_vm10 = vcmask 1044484  }
   0x9   :  { %2323 = vmatpush3.bf16.msra.mxu1 %v2603_v14  ;;  %2326 = vmatpush3.bf16.msra.mxu0 %v2613_v17  ;;  %v2649_v24 = vpack.c.bf16 %v43_v23, %v42_v22  ;;  %v2659_v27 = vpack.c.bf16 %v45_v26, %v44_v25  ;;  %v1907_v29 = vld [vmem:[%s2931_s5] ss:$0 sm:$0xff]  ;;  %v2695_v44 = vld [vmem:[%s2931_s5 + $0x1] ss:$0 sm:$0xff]  ;;  %vm1778_vm11 = vcmask 1041408   ;;  %vm920_vm12 = vcmask 1045509  }
   0xa   :  { %2327 = vmatprep.subr.bf16.mxu0 %v2502_v2  ;;  %2336 = vmatprep.subr.bf16.mxu1 %v2502_v2  ;;  %v1531_v23 = vshrl.u32 %v1530_v20, 7  ;;  %vm1781_vm13 = vcmask 1042432   ;;  %vm1091_vm14 = vcmask 1046534   ;;  %vm1784_vm15 = vcmask 1043456  }
   0xb   :  { %2088 = vmatprep.mubr.msk.f32.mxu0 %vm2504_vm4, %v2505_v10  ;;  %vm1262_vm1 = vcmask 1047559   ;;  %vm1787_vm2 = vcmask 1044480   ;;  %vm1520_vm3 = vcmask 261127  }
   0xc   :  { %2070 = vmatmul.mubr.msk.f32.vlgmr.msra.gmra.mrb[0].mxu1 %vm151_vm5, %v148_v18  ;;  %v2507_v18 = vmov 1966171168  }
   0xd   :  { %2338 = vmatpush3.bf16.msra.mxu1 %v2578_v7  ;;  %2099 = vmatprep.mubr.msk.f32.mxu1 %vm2504_vm4, %v2505_v10  ;;  %v1528_v19 = vunpack.c.l.s4 %v2507_v18 }
   0xe   :  { %2339 = vmatprep.subr.bf16.mxu1 %v2502_v2  ;;  %2329 = vmatpush3.bf16.msra.mxu0 %v2639_v21 }
   0xf   :  { %2330 = vmatprep.subr.bf16.mxu0 %v2502_v2  ;;  %v1529_v22 = vunpack.c.0.s8 %v1528_v19 }
  0x11   :  { %2341 = vmatpush3.bf16.msra.mxu1 %v2603_v14  ;;  %v2738_v25 = vsub.s32 %v1529_v22, %v1531_v23 }
  0x12   :  { %2342 = vmatprep.subr.bf16.mxu1 %v2502_v2  ;;  %2332 = vmatpush3.bf16.msra.mxu0 %v2649_v24 }
  0x13   :  { %2333 = vmatprep.subr.bf16.mxu0 %v2502_v2 }
  0x16   :  { %2335 = vmatpush3.bf16.msra.mxu0 %v2659_v27 }
  0x17   :  { %2354 = vmatprep.subr.bf16.mxu0 %v2502_v2 }
  0x79   :  { %v241_v41 = vpop.permute.xlu0 %240 }
  0xdb   :  { %v2060_v28 = vpop.f32.mrb[0].mxu0 }
  0xdc   :  { %v139_v30 = vpop.f32.mrb[1].mxu0  ;;  %v2666_v31 = vadd.f32 %v2060_v28, %v1907_v29 }
  0xdd   :  { %v2668_v32 = vadd.f32 %v1907_v29, %v139_v30 }
  0xdf   :  { %v221_v33 = vpop.f32.mrb[0].mxu1 }
  0xe0   :  { %v226_v34 = vrot.slane %v221_v33, 1  ;;  %v2071_v35 = vpop.f32.mrb[1].mxu1  ;;  %v229_v36 = vadd.f32 %v221_v33, %v2668_v32 }
  0xe1   :  { %v2743_v35 = vsub.s32 0, %v1531_v23 }
  0xe2   :  { %v230_v37 = vadd.f32 %v226_v34, %v2666_v31  ;;  %v231_v39 = vmax.f32 %v229_v36, 0.0 }
  0xe4   :  { %v232_v38 = vmax.f32 %v230_v37, 0.0 }
  0xe6   :  { %v235_v40 = vrot.slane %v232_v38, 7 }
  0xe8   :  { %v237_v42 = vsel %vm236_vm6, %v235_v40, %v231_v39 }
  0xe9   :  { %v243_v43 = vsel %vm151_vm5, %v237_v42, %v241_v41  ;;  %2100 = vmatmul.mubr.msk.f32.vlgmr.msra.gmra.mrb[2].mxu1 %vm151_vm5, %v237_v42 }
  0xea   :  { %2089 = vmatmul.mubr.msk.f32.vlgmr.msra.gmra.mrb[2].mxu0 %vm250_vm7, %v243_v43  ;;  %2344 = vmatpush3.bf16.msra.mxu1 %v2613_v17 }
  0xeb   :  { %2356 = vmatpush3.bf16.msra.mxu0 %v2578_v7  ;;  %2129 = vmatprep.mubr.msk.f32.mxu0 %vm2504_vm4, %v2505_v10 }
  0xec   :  { %2357 = vmatprep.subr.bf16.mxu0 %v2502_v2  ;;  %2345 = vmatprep.subr.bf16.mxu1 %v2502_v2 }
  0xed   :  { %2118 = vmatprep.mubr.msk.f32.mxu1 %vm2504_vm4, %v2505_v10 }
  0xee   :  { %2347 = vmatpush3.bf16.msra.mxu1 %v2639_v21 }
  0xef   :  { %2359 = vmatpush3.bf16.msra.mxu0 %v2603_v14  ;;  %2348 = vmatprep.subr.bf16.mxu1 %v2502_v2 }
  0xf0   :  { %2360 = vmatprep.subr.bf16.mxu0 %v2502_v2 }
  0xf2   :  { %2350 = vmatpush3.bf16.msra.mxu1 %v2649_v24 }
  0xf3   :  { %2351 = vmatprep.subr.bf16.mxu1 %v2502_v2 }
  0xf6   :  { %2353 = vmatpush3.bf16.msra.mxu1 %v2659_v27 }
  0xf7   :  { %2372 = vmatprep.subr.bf16.mxu1 %v2502_v2 }
 0x1bc   :  { %v393_v45 = vpop.f32.mrb[2].mxu1 }
 0x1bd   :  { %v398_v46 = vrot.slane %v393_v45, 7  ;;  %v402_v47 = vadd.f32 %v393_v45, %v2666_v31  ;;  %v320_v48 = vpop.f32.mrb[2].mxu0  ;;  %v2101_v49 = vpop.f32.mrb[3].mxu1 }
 0x1be   :  { %v2699_v50 = vadd.f32 %v2695_v44, %v320_v48  ;;  %v2090_v51 = vpop.f32.mrb[3].mxu0 }
 0x1bf   :  { %v401_v52 = vadd.f32 %v398_v46, %v2668_v32  ;;  %v404_v53 = vmax.f32 %v402_v47, 0.0 }
 0x1c0   :  { %v324_v54 = vmax.f32 %v2699_v50, 0.0 }
 0x1c1   :  { %v403_v55 = vmax.f32 %v401_v52, 0.0  ;;  %v407_v56 = vrot.slane %v404_v53, 7 }
 0x1c2   :  { %v412_v57 = vrot.slane %v324_v54, 7  ;;  %v1533_v30 = vrot.slane %v324_v54, %v2738_v25 }
 0x1c3   :  { %v492_v58 = vrot.slane %v403_v55, 1  ;;  %v409_v59 = vsel %vm408_vm8, %v407_v56, %v403_v55 }
 0x1c4   :  { %413 = vrot.lane.b32.xlu0 %v412_v57, %s2506_s3  ;;  %v1534_v37 = vcombine.high %v1533_v30, %v1533_v30  ;;  %v1541_v40 = vrot.slane %v1533_v30, %v2738_v25 }
 0x1c5   :  { %v493_v60 = vsel %vm236_vm6, %v404_v53, %v492_v58 }
 0x1c6   :  { %2130 = vmatmul.mubr.msk.f32.vlgmr.msra.gmra.mrb[4].mxu0 %vm151_vm5, %v493_v60  ;;  %v1548_v43 = vrot.slane %v1534_v37, %v2738_v25 }
 0x1c7   :  { %2362 = vmatpush3.bf16.msra.mxu0 %v2613_v17  ;;  %2148 = vmatprep.mubr.msk.f32.mxu0 %vm2504_vm4, %v2505_v10 }
 0x1c8   :  { %2363 = vmatprep.subr.bf16.mxu0 %v2502_v2 }
 0x1cb   :  { %2365 = vmatpush3.bf16.msra.mxu0 %v2639_v21 }
 0x1cc   :  { %2366 = vmatprep.subr.bf16.mxu0 %v2502_v2 }
 0x1cf   :  { %2368 = vmatpush3.bf16.msra.mxu0 %v2649_v24 }
 0x1d0   :  { %2369 = vmatprep.subr.bf16.mxu0 %v2502_v2 }
 0x1d3   :  { %2371 = vmatpush3.bf16.msra.mxu0 %v2659_v27 }
 0x1d4   :  { %2390 = vmatprep.subr.bf16.mxu0 %v2502_v2 }
 0x236   :  { %v414_v61 = vpop.permute.xlu0 %413 }
 0x237   :  { %v416_v62 = vsel %vm151_vm5, %v409_v59, %v414_v61 }
 0x238   :  { %v418_v63 = vrot.slane %v416_v62, 1 }
 0x23a   :  { %2119 = vmatmul.mubr.msk.f32.vlgmr.msra.gmra.mrb[4].mxu1 %vm250_vm7, %v418_v63 }
 0x23b   :  { %2374 = vmatpush3.bf16.msra.mxu1 %v2578_v7  ;;  %2159 = vmatprep.mubr.msk.f32.mxu1 %vm2504_vm4, %v2505_v10 }
 0x23c   :  { %2375 = vmatprep.subr.bf16.mxu1 %v2502_v2 }
 0x23f   :  { %2377 = vmatpush3.bf16.msra.mxu1 %v2603_v14 }
 0x240   :  { %2378 = vmatprep.subr.bf16.mxu1 %v2502_v2 }
 0x299   :  { %v562_v0 = vpop.f32.mrb[4].mxu0 }
 0x29a   :  { %v567_v1 = vrot.slane %v562_v0, 6  ;;  %v568_v3 = vrot.slane %v562_v0, 7  ;;  %v2131_v4 = vpop.f32.mrb[5].mxu0 }
 0x29c   :  { %v571_v5 = vadd.f32 %v567_v1, %v2668_v32  ;;  %v572_v6 = vadd.f32 %v568_v3, %v2666_v31 }
 0x29e   :  { %v573_v8 = vmax.f32 %v571_v5, 0.0  ;;  %v574_v9 = vmax.f32 %v572_v6, 0.0 }
 0x2a0   :  { %v577_v11 = vrot.slane %v574_v9, 7  ;;  %v662_v12 = vrot.slane %v573_v8, 2  ;;  %v663_v13 = vrot.slane %v574_v9, 1 }
 0x2a2   :  { %v664_v15 = vsel %vm236_vm6, %v663_v13, %v662_v12  ;;  %v579_v16 = vsel %vm578_vm9, %v577_v11, %v573_v8 }
 0x2a3   :  { %2160 = vmatmul.mubr.msk.f32.vlgmr.msra.gmra.mrb[6].mxu1 %vm151_vm5, %v664_v15 }
 0x2a4   :  { %2380 = vmatpush3.bf16.msra.mxu1 %v2613_v17  ;;  %2178 = vmatprep.mubr.msk.f32.mxu1 %vm2504_vm4, %v2505_v10 }
 0x2a5   :  { %2381 = vmatprep.subr.bf16.mxu1 %v2502_v2 }
 0x2a8   :  { %2383 = vmatpush3.bf16.msra.mxu1 %v2639_v21 }
 0x2a9   :  { %2384 = vmatprep.subr.bf16.mxu1 %v2502_v2 }
 0x2ac   :  { %2386 = vmatpush3.bf16.msra.mxu1 %v2649_v24 }
 0x2ad   :  { %2387 = vmatprep.subr.bf16.mxu1 %v2502_v2 }
 0x2b0   :  { %2389 = vmatpush3.bf16.msra.mxu1 %v2659_v27 }
 0x2b1   :  { %2408 = vmatprep.subr.bf16.mxu1 %v2502_v2 }
 0x30d   :  { %v487_v26 = vpop.f32.mrb[4].mxu1 }
 0x30e   :  { %v488_v28 = vadd.f32 %v2695_v44, %v487_v26  ;;  %v2120_v29 = vpop.f32.mrb[5].mxu1 }
 0x310   :  { %v491_v33 = vmax.f32 %v488_v28, 0.0 }
 0x312   :  { %v1557_v34 = vrot.slane %v491_v33, %v2738_v25  ;;  %v582_v36 = vrot.slane %v491_v33, 6 }
 0x314   :  { %v1558_v38 = vcombine.high %v1557_v34, %v1557_v34  ;;  %v1565_v39 = vrot.slane %v1557_v34, %v2738_v25  ;;  %583 = vrot.lane.b32.xlu1 %v582_v36, %s2506_s3 }
 0x316   :  { %v1572_v41 = vrot.slane %v1558_v38, %v2738_v25  ;;  %v1709_v42 = vrot.slane %v1565_v39, %v2743_v35 }
 0x318   :  { %v1713_v45 = vrot.slane %v1572_v41, %v2743_v35  ;;  %v1776_v46 = vsel %vm69_vm0, %v1541_v40, %v1709_v42 }
 0x31a   :  { %v1777_v47 = vsel %vm69_vm0, %v1548_v43, %v1713_v45 }
 0x376   :  { %v733_v48 = vpop.f32.mrb[6].mxu1 }
 0x377   :  { %v738_v49 = vrot.slane %v733_v48, 5  ;;  %v739_v50 = vrot.slane %v733_v48, 6  ;;  %v2161_v51 = vpop.f32.mrb[7].mxu1 }
 0x379   :  { %v742_v52 = vadd.f32 %v738_v49, %v2668_v32  ;;  %v743_v53 = vadd.f32 %v739_v50, %v2666_v31 }
 0x37b   :  { %v745_v54 = vmax.f32 %v743_v53, 0.0  ;;  %v744_v55 = vmax.f32 %v742_v52, 0.0 }
 0x37d   :  { %v748_v56 = vrot.slane %v745_v54, 7  ;;  %v833_v61 = vrot.slane %v744_v55, 3  ;;  %v834_v62 = vrot.slane %v745_v54, 2 }
 0x37f   :  { %v750_v57 = vsel %vm749_vm10, %v748_v56, %v744_v55  ;;  %v835_v63 = vsel %vm236_vm6, %v834_v62, %v833_v61 }
 0x386   :  { %v584_v58 = vpop.permute.xlu1 %583 }
 0x387   :  { %v586_v59 = vsel %vm151_vm5, %v579_v16, %v584_v58 }
 0x388   :  { %v588_v60 = vrot.slane %v586_v59, 2 }
 0x38a   :  { %2149 = vmatmul.mubr.msk.f32.vlgmr.msra.gmra.mrb[6].mxu0 %vm250_vm7, %v588_v60 }
 0x38b   :  { %2392 = vmatpush3.bf16.msra.mxu0 %v2578_v7  ;;  %2189 = vmatprep.mubr.msk.f32.mxu0 %vm2504_vm4, %v2505_v10 }
 0x38c   :  { %2393 = vmatprep.subr.bf16.mxu0 %v2502_v2 }
 0x38f   :  { %2395 = vmatpush3.bf16.msra.mxu0 %v2603_v14 }
 0x390   :  { %2396 = vmatprep.subr.bf16.mxu0 %v2502_v2 }
 0x392   :  { %2190 = vmatmul.mubr.msk.f32.vlgmr.msra.gmra.mrb[8].mxu0 %vm151_vm5, %v835_v63 }
 0x393   :  { %2398 = vmatpush3.bf16.msra.mxu0 %v2613_v17  ;;  %2208 = vmatprep.mubr.msk.f32.mxu0 %vm2504_vm4, %v2505_v10 }
 0x394   :  { %2399 = vmatprep.subr.bf16.mxu0 %v2502_v2 }
 0x397   :  { %2401 = vmatpush3.bf16.msra.mxu0 %v2639_v21 }
 0x398   :  { %2402 = vmatprep.subr.bf16.mxu0 %v2502_v2 }
 0x39b   :  { %2404 = vmatpush3.bf16.msra.mxu0 %v2649_v24 }
 0x39c   :  { %2405 = vmatprep.subr.bf16.mxu0 %v2502_v2 }
 0x39f   :  { %2407 = vmatpush3.bf16.msra.mxu0 %v2659_v27 }
 0x3a0   :  { %2426 = vmatprep.subr.bf16.mxu0 %v2502_v2 }
 0x45d   :  { %v657_v0 = vpop.f32.mrb[6].mxu0 }
 0x45e   :  { %v658_v1 = vadd.f32 %v2695_v44, %v657_v0  ;;  %v2150_v3 = vpop.f32.mrb[7].mxu0 }
 0x460   :  { %v661_v4 = vmax.f32 %v658_v1, 0.0 }
 0x462   :  { %v753_v5 = vrot.slane %v661_v4, 5  ;;  %v1579_v6 = vrot.slane %v661_v4, %v2738_v25 }
 0x464   :  { %v1580_v8 = vcombine.high %v1579_v6, %v1579_v6  ;;  %v1587_v9 = vrot.slane %v1579_v6, %v2738_v25  ;;  %754 = vrot.lane.b32.xlu1 %v753_v5, %s2506_s3 }
 0x465   :  { %v904_v11 = vpop.f32.mrb[8].mxu0 }
 0x466   :  { %v1594_v12 = vrot.slane %v1580_v8, %v2738_v25  ;;  %v1719_v13 = vrot.slane %v1587_v9, %v2743_v35  ;;  %v909_v15 = vrot.slane %v904_v11, 4  ;;  %v910_v16 = vrot.slane %v904_v11, 5  ;;  %v2191_v18 = vpop.f32.mrb[9].mxu0 }
 0x468   :  { %v1723_v19 = vrot.slane %v1594_v12, %v2743_v35  ;;  %v1779_v20 = vsel %vm1778_vm11, %v1776_v46, %v1719_v13  ;;  %v913_v22 = vadd.f32 %v909_v15, %v2668_v32  ;;  %v914_v23 = vadd.f32 %v910_v16, %v2666_v31 }
 0x46a   :  { %v1780_v26 = vsel %vm1778_vm11, %v1777_v47, %v1723_v19  ;;  %v916_v28 = vmax.f32 %v914_v23, 0.0  ;;  %v915_v29 = vmax.f32 %v913_v22, 0.0 }
 0x46c   :  { %v919_v30 = vrot.slane %v916_v28, 7  ;;  %v1004_v38 = vrot.slane %v915_v29, 4  ;;  %v1005_v39 = vrot.slane %v916_v28, 3 }
 0x46e   :  { %v921_v33 = vsel %vm920_vm12, %v919_v30, %v915_v29  ;;  %v1006_v40 = vsel %vm236_vm6, %v1005_v39, %v1004_v38 }
 0x4d6   :  { %v755_v34 = vpop.permute.xlu1 %754 }
 0x4d7   :  { %v757_v36 = vsel %vm151_vm5, %v750_v57, %v755_v34 }
 0x4d8   :  { %v759_v37 = vrot.slane %v757_v36, 3 }
 0x4da   :  { %2179 = vmatmul.mubr.msk.f32.vlgmr.msra.gmra.mrb[8].mxu1 %vm250_vm7, %v759_v37 }
 0x4db   :  { %2410 = vmatpush3.bf16.msra.mxu1 %v2578_v7  ;;  %2219 = vmatprep.mubr.msk.f32.mxu1 %vm2504_vm4, %v2505_v10 }
 0x4dc   :  { %2411 = vmatprep.subr.bf16.mxu1 %v2502_v2 }
 0x4df   :  { %2413 = vmatpush3.bf16.msra.mxu1 %v2603_v14 }
 0x4e0   :  { %2414 = vmatprep.subr.bf16.mxu1 %v2502_v2 }
 0x4e2   :  { %2220 = vmatmul.mubr.msk.f32.vlgmr.msra.gmra.mrb[10].mxu1 %vm151_vm5, %v1006_v40 }
 0x4e3   :  { %2416 = vmatpush3.bf16.msra.mxu1 %v2613_v17  ;;  %2238 = vmatprep.mubr.msk.f32.mxu1 %vm2504_vm4, %v2505_v10 }
 0x4e4   :  { %2417 = vmatprep.subr.bf16.mxu1 %v2502_v2 }
 0x4e7   :  { %2419 = vmatpush3.bf16.msra.mxu1 %v2639_v21 }
 0x4e8   :  { %2420 = vmatprep.subr.bf16.mxu1 %v2502_v2 }
 0x4eb   :  { %2422 = vmatpush3.bf16.msra.mxu1 %v2649_v24 }
 0x4ec   :  { %2423 = vmatprep.subr.bf16.mxu1 %v2502_v2 }
 0x4ef   :  { %2425 = vmatpush3.bf16.msra.mxu1 %v2659_v27 }
 0x4f0   :  { %2444 = vmatprep.subr.bf16.mxu1 %v2502_v2 }
 0x5ad   :  { %v828_v41 = vpop.f32.mrb[8].mxu1 }
 0x5ae   :  { %v829_v42 = vadd.f32 %v2695_v44, %v828_v41  ;;  %v2180_v43 = vpop.f32.mrb[9].mxu1 }
 0x5b0   :  { %v832_v45 = vmax.f32 %v829_v42, 0.0 }
 0x5b2   :  { %v924_v46 = vrot.slane %v832_v45, 4  ;;  %v1601_v47 = vrot.slane %v832_v45, %v2738_v25 }
 0x5b4   :  { %v1602_v48 = vcombine.high %v1601_v47, %v1601_v47  ;;  %v1609_v49 = vrot.slane %v1601_v47, %v2738_v25  ;;  %925 = vrot.lane.b32.xlu0 %v924_v46, %s2506_s3 }
 0x5b5   :  { %v1075_v50 = vpop.f32.mrb[10].mxu1 }
 0x5b6   :  { %v1616_v51 = vrot.slane %v1602_v48, %v2738_v25  ;;  %v1729_v52 = vrot.slane %v1609_v49, %v2743_v35  ;;  %v1080_v53 = vrot.slane %v1075_v50, 3  ;;  %v1081_v54 = vrot.slane %v1075_v50, 4  ;;  %v2221_v55 = vpop.f32.mrb[11].mxu1 }
 0x5b8   :  { %v1733_v56 = vrot.slane %v1616_v51, %v2743_v35  ;;  %v1782_v57 = vsel %vm1781_vm13, %v1779_v20, %v1729_v52  ;;  %v1084_v58 = vadd.f32 %v1080_v53, %v2668_v32  ;;  %v1085_v59 = vadd.f32 %v1081_v54, %v2666_v31 }
 0x5ba   :  { %v1783_v60 = vsel %vm1781_vm13, %v1780_v26, %v1733_v56  ;;  %v1087_v61 = vmax.f32 %v1085_v59, 0.0  ;;  %v1086_v62 = vmax.f32 %v1084_v58, 0.0 }
 0x5bc   :  { %v1090_v63 = vrot.slane %v1087_v61, 7  ;;  %v1175_v5 = vrot.slane %v1086_v62, 5  ;;  %v1176_v6 = vrot.slane %v1087_v61, 4 }
 0x5be   :  { %v1092_v0 = vsel %vm1091_vm14, %v1090_v63, %v1086_v62  ;;  %v1177_v8 = vsel %vm236_vm6, %v1176_v6, %v1175_v5 }
 0x626   :  { %v926_v1 = vpop.permute.xlu0 %925 }
 0x627   :  { %v928_v3 = vsel %vm151_vm5, %v921_v33, %v926_v1 }
 0x628   :  { %v930_v4 = vrot.slane %v928_v3, 4 }
 0x62a   :  { %2209 = vmatmul.mubr.msk.f32.vlgmr.msra.gmra.mrb[10].mxu0 %vm250_vm7, %v930_v4 }
 0x62b   :  { %2428 = vmatpush3.bf16.msra.mxu0 %v2578_v7  ;;  %2249 = vmatprep.mubr.msk.f32.mxu0 %vm2504_vm4, %v2505_v10 }
 0x62c   :  { %2429 = vmatprep.subr.bf16.mxu0 %v2502_v2 }
 0x62f   :  { %2431 = vmatpush3.bf16.msra.mxu0 %v2603_v14 }
 0x630   :  { %2432 = vmatprep.subr.bf16.mxu0 %v2502_v2 }
 0x632   :  { %2250 = vmatmul.mubr.msk.f32.vlgmr.msra.gmra.mrb[12].mxu0 %vm151_vm5, %v1177_v8 }
 0x633   :  { %2434 = vmatpush3.bf16.msra.mxu0 %v2613_v17  ;;  %2268 = vmatprep.mubr.msk.f32.mxu0 %vm2504_vm4, %v2505_v10 }
 0x634   :  { %2435 = vmatprep.subr.bf16.mxu0 %v2502_v2 }
 0x637   :  { %2437 = vmatpush3.bf16.msra.mxu0 %v2639_v21 }
 0x638   :  { %2438 = vmatprep.subr.bf16.mxu0 %v2502_v2 }
 0x63b   :  { %2440 = vmatpush3.bf16.msra.mxu0 %v2649_v24 }
 0x63c   :  { %2441 = vmatprep.subr.bf16.mxu0 %v2502_v2 }
 0x63f   :  { %2443 = vmatpush3.bf16.msra.mxu0 %v2659_v27 }
 0x6fd   :  { %v999_v9 = vpop.f32.mrb[10].mxu0 }
 0x6fe   :  { %v1000_v11 = vadd.f32 %v2695_v44, %v999_v9  ;;  %v2210_v12 = vpop.f32.mrb[11].mxu0 }
 0x700   :  { %v1003_v13 = vmax.f32 %v1000_v11, 0.0 }
 0x702   :  { %v1095_v15 = vrot.slane %v1003_v13, 3  ;;  %v1623_v16 = vrot.slane %v1003_v13, %v2738_v25 }
 0x704   :  { %v1624_v18 = vcombine.high %v1623_v16, %v1623_v16  ;;  %v1631_v19 = vrot.slane %v1623_v16, %v2738_v25  ;;  %1096 = vrot.lane.b32.xlu1 %v1095_v15, %s2506_s3 }
 0x705   :  { %v1246_v20 = vpop.f32.mrb[12].mxu0 }
 0x706   :  { %v1638_v22 = vrot.slane %v1624_v18, %v2738_v25  ;;  %v1739_v23 = vrot.slane %v1631_v19, %v2743_v35  ;;  %v1251_v26 = vrot.slane %v1246_v20, 2  ;;  %v1252_v28 = vrot.slane %v1246_v20, 3  ;;  %v2251_v29 = vpop.f32.mrb[13].mxu0 }
 0x707   :  { %v50_v29 = vld [vmem:[%s2932_s6 + $0x8] sm:$0xff] }
 0x708   :  { %v1743_v30 = vrot.slane %v1638_v22, %v2743_v35  ;;  %v1255_v33 = vadd.f32 %v1251_v26, %v2668_v32  ;;  %v1256_v34 = vadd.f32 %v1252_v28, %v2666_v31  ;;  %v1785_v36 = vsel %vm1784_vm15, %v1782_v57, %v1739_v23  ;;  %v49_v28 = vld [vmem:[%s2932_s6] sm:$0xff] }
 0x70a   :  { %v1258_v37 = vmax.f32 %v1256_v34, 0.0  ;;  %v1786_v38 = vsel %vm1784_vm15, %v1783_v60, %v1743_v30  ;;  %v1257_v39 = vmax.f32 %v1255_v33, 0.0  ;;  %v2462_v30 = vpack.c.bf16 %v50_v29, %v49_v28  ;;  %v51_v33 = vld [vmem:[%s2932_s6 + $0x10] sm:$0xff]  ;;  %v52_v34 = vld [vmem:[%s2932_s6 + $0x18] sm:$0xff]  ;;  %s2508_s6 = smov [#allocation2]  }
 0x70b   :  { %s1893_s29 = sshll.u32 %s2508_s6, 4  ;;  %s1894_s29 = int_to_ptr.vmem [resolvable:$true] %s1893_s29 }
 0x70c   :  { %v1261_v40 = vrot.slane %v1258_v37, 7  ;;  %v1346_v46 = vrot.slane %v1257_v39, 6  ;;  %v1347_v47 = vrot.slane %v1258_v37, 5  ;;  %2463 = vmatprep.subr.bf16.mxu0 %v2462_v30  ;;  %s2478_s30 = scalar_lea.vmem %s1894_s29, 64  ;;  %p2483_p1 = scmp.lt.s32.totalorder %s1894_s29, %s1894_s29 }
 0x70d   :  { %p2479_p0 = scmp.ne.s32.totalorder %s1894_s29, %s2478_s30  ;;  %p2484_p2 = scmp.lt.s32.totalorder %s2478_s30, %s2478_s30 }
 0x70e   :  { %v1263_v41 = vsel %vm1262_vm1, %v1261_v40, %v1257_v39  ;;  %v1348_v48 = vsel %vm236_vm6, %v1347_v47, %v1346_v46  ;;  %vm1790_vm6 = vcmask 1045504  }
 0x70f   :  { %p2485_p3 = por %p2484_p2, %p2483_p1 }
 0x711   :  { %p2486_p4 = pnand %p2485_p3, %p2479_p0 }
 0x776   :  { %v1097_v42 = vpop.permute.xlu1 %1096 }
 0x777   :  { %v1099_v43 = vsel %vm151_vm5, %v1092_v0, %v1097_v42 }
 0x778   :  { %v1101_v45 = vrot.slane %v1099_v43, 5 }
 0x77a   :  { %2239 = vmatmul.mubr.msk.f32.vlgmr.msra.gmra.mrb[12].mxu1 %vm250_vm7, %v1101_v45 }
 0x77b   :  { %2446 = vmatpush3.bf16.msra.mxu1 %v2578_v7  ;;  %2279 = vmatprep.mubr.msk.f32.mxu1 %vm2504_vm4, %v2505_v10 }
 0x77c   :  { %2447 = vmatprep.subr.bf16.mxu1 %v2502_v2 }
 0x77f   :  { %2449 = vmatpush3.bf16.msra.mxu1 %v2603_v14 }
 0x780   :  { %2450 = vmatprep.subr.bf16.mxu1 %v2502_v2 }
 0x782   :  { %2280 = vmatmul.mubr.msk.f32.vlgmr.msra.gmra.mrb[14].mxu1 %vm151_vm5, %v1348_v48 }
 0x783   :  { %2452 = vmatpush3.bf16.msra.mxu1 %v2613_v17  ;;  %2298 = vmatprep.mubr.msk.f32.mxu1 %vm2504_vm4, %v2505_v10  ;;  %vm1522_vm4 = vcmask 253952  }
 0x784   :  { %2453 = vmatprep.subr.bf16.mxu1 %v2502_v2 }
 0x787   :  { %2455 = vmatpush3.bf16.msra.mxu1 %v2639_v21 }
 0x788   :  { %2456 = vmatprep.subr.bf16.mxu1 %v2502_v2 }
 0x78b   :  { %2458 = vmatpush3.bf16.msra.mxu1 %v2649_v24 }
 0x78c   :  { %2459 = vmatprep.subr.bf16.mxu1 %v2502_v2 }
 0x78f   :  { %2461 = vmatpush3.bf16.msra.mxu1 %v2659_v27 }
 0x84d   :  { %v1170_v7 = vpop.f32.mrb[12].mxu1 }
 0x84e   :  { %v1171_v14 = vadd.f32 %v2695_v44, %v1170_v7  ;;  %v2240_v49 = vpop.f32.mrb[13].mxu1 }
 0x850   :  { %v1174_v17 = vmax.f32 %v1171_v14, 0.0 }
 0x852   :  { %v1266_v50 = vrot.slane %v1174_v17, 2  ;;  %v1645_v10 = vrot.slane %v1174_v17, %v2738_v25 }
 0x854   :  { %v1646_v51 = vcombine.high %v1645_v10, %v1645_v10  ;;  %v1653_v52 = vrot.slane %v1645_v10, %v2738_v25  ;;  %1267 = vrot.lane.b32.xlu0 %v1266_v50, %s2506_s3 }
 0x855   :  { %v1417_v21 = vpop.f32.mrb[14].mxu1 }
 0x856   :  { %v1660_v24 = vrot.slane %v1646_v51, %v2738_v25  ;;  %v1749_v2 = vrot.slane %v1653_v52, %v2743_v35  ;;  %v1422_v27 = vrot.slane %v1417_v21, 1  ;;  %v1423_v53 = vrot.slane %v1417_v21, 2  ;;  %v2281_v54 = vpop.f32.mrb[15].mxu1 }
 0x858   :  { %v1753_v55 = vrot.slane %v1660_v24, %v2743_v35  ;;  %v1426_v56 = vadd.f32 %v1422_v27, %v2668_v32  ;;  %v1427_v57 = vadd.f32 %v1423_v53, %v2666_v31  ;;  %v1788_v58 = vsel %vm1787_vm2, %v1785_v36, %v1749_v2 }
 0x859   :  { %v2466_v36 = vpack.c.bf16 %v52_v34, %v51_v33 }
 0x85a   :  { %v1428_v59 = vmax.f32 %v1426_v56, 0.0  ;;  %v1429_v60 = vmax.f32 %v1427_v57, 0.0  ;;  %v1789_v61 = vsel %vm1787_vm2, %v1786_v38, %v1753_v55 }
 0x85c   :  { %v1432_v62 = vrot.slane %v1429_v60, 7  ;;  %1521 = vst.msk [vmem:[#allocation2 - $0x7] sm:$0x80] %vm1520_vm3, %v1428_v59 }
 0x85e   :  { %1523 = vst.msk [vmem:[#allocation2 + $0x1] sm:$0x1] %vm1522_vm4, %v1432_v62 }
 0x8c6   :  { %v1268_v63 = vpop.permute.xlu0 %1267 }
 0x8c7   :  { %v1270_v0 = vsel %vm151_vm5, %v1263_v41, %v1268_v63 }
 0x8c8   :  { %v1272_v1 = vrot.slane %v1270_v0, 6 }
 0x8ca   :  { %2269 = vmatmul.mubr.msk.f32.vlgmr.msra.gmra.mrb[14].mxu0 %vm250_vm7, %v1272_v1 }
 0x8cb   :  { %2465 = vmatpush3.bf16.msra.mxu0 %v2462_v30 }
 0x8cc   :  { %2467 = vmatprep.subr.bf16.mxu0 %v2466_v36 }
 0x8cf   :  { %2469 = vmatpush3.bf16.msra.mxu0 %v2466_v36 }
 0x99d   :  { %v1341_v3 = vpop.f32.mrb[14].mxu0 }
 0x99e   :  { %v1342_v32 = vadd.f32 %v2695_v44, %v1341_v3  ;;  %v2270_v4 = vpop.f32.mrb[15].mxu0 }
 0x9a0   :  { %v1345_v31 = vmax.f32 %v1342_v32, 0.0 }
 0x9a2   :  { %v1436_v5 = vrot.slane %v1345_v31, 1  ;;  %v1667_v6 = vrot.slane %v1345_v31, %v2738_v25 }
 0x9a4   :  { %v1668_v8 = vcombine.high %v1667_v6, %v1667_v6  ;;  %v1675_v9 = vrot.slane %v1667_v6, %v2738_v25  ;;  %1437 = vrot.lane.b32.xlu1 %v1436_v5, %s2506_s3 }
 0x9a6   :  { %v1682_v11 = vrot.slane %v1668_v8, %v2738_v25  ;;  %v1759_v12 = vrot.slane %v1675_v9, %v2743_v35 }
 0x9a8   :  { %v1763_v13 = vrot.slane %v1682_v11, %v2743_v35  ;;  %v1791_v15 = vsel %vm1790_vm6, %v1788_v58, %v1759_v12 }
 0x9aa   :  { %v1792_v16 = vsel %vm1790_vm6, %v1789_v61, %v1763_v13 }
 0xa16   :  { %v1438_v18 = vpop.permute.xlu1 %1437 }
 0xa17   :  { %v1440_v19 = vsel %vm151_vm5, %v1428_v59, %v1438_v18  ;;  %v1441_v20 = vsel %vm151_vm5, %v1432_v62, %v1438_v18 }
 0xa18   :  { %v1444_v22 = vrot.slane %v1440_v19, 7  ;;  %v1445_v23 = vrot.slane %v1441_v20, 7 }
 0xa1a   :  { %v1446_v26 = vsel %vm69_vm0, %v1444_v22, %v1445_v23  ;;  %vm1525_vm0 = vcmask 254976  }
 0xa1b   :  { %2299 = vmatmul.mubr.msk.f32.vlgmr.msra.gmra.mrb[16].mxu1 %vm250_vm7, %v1446_v26  ;;  %vm1793_vm7 = vcmask 1046528  }
 0xaee   :  { %v1515_v37 = vpop.f32.mrb[16].mxu1 }
 0xaef   :  { %v1516_v38 = vadd.f32 %v2695_v44, %v1515_v37  ;;  %v2300_v39 = vpop.f32.mrb[17].mxu1 }
 0xaf1   :  { %v1519_v40 = vmax.f32 %v1516_v38, 0.0 }
 0xaf3   :  { %1526 = vst.msk [vmem:[#allocation2 + $0x2] sm:$0x3] %vm1525_vm0, %v1519_v40  ;;  %v1690_v41 = vrot.slane %v1519_v40, %v2738_v25 }
 0xaf5   :  { %v1691_v42 = vcombine.high %v1690_v41, %v1690_v41  ;;  %v1698_v43 = vrot.slane %v1690_v41, %v2738_v25 }
 0xaf7   :  { %v1705_v45 = vrot.slane %v1691_v42, %v2738_v25  ;;  %v1769_v46 = vrot.slane %v1698_v43, %v2743_v35 }
 0xaf9   :  { %v1773_v47 = vrot.slane %v1705_v45, %v2743_v35  ;;  %v1794_v48 = vsel %vm1793_vm7, %v1791_v15, %v1769_v46 }
 0xafa   :  { %2309 = vmatprep.mubr.msk.f32.mxu0 %vm151_vm5, %v1794_v48 }
 0xafb   :  { %v1795_v44 = vsel %vm1793_vm7, %v1792_v16, %v1773_v47 }
 0xafc   :  { %2310 = vmatmul.mubr.msk.f32.vlgmr.msra.gmra.mrb[16].mxu0 %vm151_vm5, %v1795_v44 }
 0xafd   :  { %2489 = shalt.err (!%p2486_p4)
}
 0xafe   :  { %s2490_s11 = scalar_lea.hbm %s2935_s9, 64 }
 0xaff   :  { %p2491_p5 = scmp.ne.s32.totalorder %s2935_s9, %s2490_s11  ;;  %p2494_p6 = scmp.lt.u32.totalorder %s2490_s11, %s2935_s9 }
 0xb01   :  { %p2496_p7 = pnand %p2494_p6, %p2491_p5 }
 0xb03   :  { %2499 = shalt.err (!%p2496_p7)
}
 0xb04   :  { %s2509_s16 = smov 2   ;;  %v1929_v25 = vld [vmem:[%s2933_s7] ss:$0 sm:$0xff]  ;;  %vm1883_vm5 = vcmask 15360  }
 0xb05   :  { %1899 = dma.vmem_to_hbm [thread:$0]  %s1894_s29, 64, %s2935_s9, [#allocation3], %s2506_s3, %s2506_s3, %s2509_s16  }
 0xbcf   :  { %v2311_v35 = vpop.f32.mrb[16].mxu0 }
 0xbd0   :  { %v1880_v7 = vadd.f32 %v2311_v35, %v1929_v25  ;;  %v1874_v14 = vpop.f32.mrb[17].mxu0 }
 0xbd1   :  { %v1875_v49 = vadd.f32 %v1929_v25, %v1874_v14 }
 0xbd2   :  { %1885 = vst.msk [vmem:[%s2934_s8 + $0x8] sm:$0xff] %vm1883_vm5, %v1880_v7 }
 0xbd3   :  { %1884 = vst.msk [vmem:[%s2934_s8] sm:$0xff] %vm1883_vm5, %v1875_v49 }
 0xbd4   :  { %2500 = dma.done.wait [#allocation3], 64  }
 0xbd5   :  { %2501 = vsyncadd [#allocation3], 4294967232 }
 0xbd6   :  { %1905 = vsyncpa [#allocation3], 1 }

</bundles_post_ra>
